<compile_context>
chip_gen: v6e
topology: v6e:2x2x1
jax: 0.10.0
libtpu: 0.0.40
codegen_flags: <defaults>
</compile_context>

<pallas_src>
import math

import jax
import jax.numpy as jnp
import numpy as np
from jax import lax
from jax.experimental import pallas as pl
from jax.experimental.pallas import tpu as pltpu

EPS = 1e-16  # eps used by the Entropy criterion in contrastyou


def _round_up(a, b):
    return ((a + b - 1) // b) * b


def _imsat_stats_pallas(x, *, K, m, L, target_tile_bytes, num_shards, core_parallel):
    """Returns (colsum (K,), entsum scalar = sum x*log(x+eps)) via a streaming kernel."""
    N = x.shape[0]

    # Single small pad only when N is not a multiple of the packing factor m
    # (zero rows contribute exactly 0 to both sums). Aligned N => zero-copy bitcast.
    N_pad = _round_up(N, m)
    if N_pad != N:
        x = jnp.pad(x, ((0, N_pad - N), (0, 0)))
    rows = N_pad // m
    xp = x.reshape(rows, L)                         # packed, lane-dense view

    # ---- tiling along the packed sample axis -----------------------------------
    bytes_per_row = L * x.dtype.itemsize
    tile_cap = max(8, (target_tile_bytes // bytes_per_row) // 8 * 8)
    tile_rows = min(tile_cap, (rows // 8) * 8)      # multiple of 8, never > rows
    tiles_total = -(-rows // tile_rows)
    num_shards = max(1, min(num_shards, tiles_total))
    tiles_per_shard = -(-tiles_total // num_shards)
    # True iff the grid's coverage overshoots `rows` (ragged last tile and/or
    # shard-rounding tiles). Those rows are masked in-kernel, never padded.
    need_mask = (num_shards * tiles_per_shard * tile_rows) != rows

    def kernel(x_ref, colsum_ref, entsum_ref):
        s = pl.program_id(0)
        i = pl.program_id(1)

        @pl.when(i == 0)
        def _init():
            colsum_ref[...] = jnp.zeros_like(colsum_ref)
            entsum_ref[...] = jnp.zeros_like(entsum_ref)

        xt = x_ref[...].astype(jnp.float32)          # (tile_rows, L)
        if need_mask:
            # Rows at/after `rows` are Pallas out-of-bounds padding (unspecified
            # contents) or shard-overrun re-reads: zero them so they contribute 0.
            start = (s * tiles_per_shard + i) * tile_rows
            row = lax.broadcasted_iota(jnp.int32, (tile_rows, L), 0)
            xt = jnp.where(row < rows - start, xt, 0.0)
        ent = xt * jnp.log(xt + EPS)                 # +x*log(x+eps); negated in wrapper
        # Layout-preserving split of the sublane axis into groups of 8; the axis-0
        # reduction is pure vreg-wise VALU adds (no per-step XLU work).
        colsum_ref[...] += jnp.sum(xt.reshape(tile_rows // 8, 8, L), axis=0, keepdims=True)
        entsum_ref[...] += jnp.sum(ent.reshape(tile_rows // 8, 8, L), axis=0, keepdims=True)

    lead_sem = pltpu.CORE_PARALLEL if core_parallel else "parallel"
    vmem_need = (2 * tile_rows * L * x.dtype.itemsize   # double-buffered input tile
                 + 4 * 8 * L * 4                        # output accumulator blocks
                 + (2 << 20))                           # slack
    colsum_parts, entsum_parts = pl.pallas_call(
        kernel,
        out_shape=(
            jax.ShapeDtypeStruct((num_shards, 8, L), jnp.float32),
            jax.ShapeDtypeStruct((num_shards, 8, L), jnp.float32),
        ),
        grid_spec=pltpu.PrefetchScalarGridSpec(
            num_scalar_prefetch=0,
            grid=(num_shards, tiles_per_shard),
            in_specs=[
                pl.BlockSpec((tile_rows, L),
                             lambda s, i: (s * tiles_per_shard + i, 0)),
            ],
            out_specs=[
                pl.BlockSpec((1, 8, L), lambda s, i: (s, 0, 0)),
                pl.BlockSpec((1, 8, L), lambda s, i: (s, 0, 0)),
            ],
        ),
        compiler_params=pltpu.CompilerParams(
            dimension_semantics=(lead_sem, "arbitrary"),
            vmem_limit_bytes=int(min(max(vmem_need, 16 << 20), 56 << 20)),
        ),
    )(xp)

    # Tiny epilogue: un-pack the lane-packed column sums back to (K,).
    colsum = jnp.sum(colsum_parts, axis=(0, 1)).reshape(m, K).sum(axis=0)   # (K,)
    entsum = jnp.sum(entsum_parts)                                          # scalar
    return colsum, entsum


def imsat_dynamic_weight_forward(x, dynamic_weight, *, use_dynamic=True,
                                 target_tile_bytes=4 * 1024 * 1024,
                                 num_shards=1,            # set 2 on v7x
                                 core_parallel=False,     # set True on v7x with num_shards=2
                                 small_input_bytes=1 << 20):
    """IMSATDynamicWeight.forward. x: (N, K) simplex rows. Returns (mi, new_dynamic_weight)."""
    N, K = x.shape
    n_total = jnp.float32(N)

    m = 128 // math.gcd(K, 128)
    L = m * K
    rows_full = N // m

    # Fast path: fixed pallas_call overhead dwarfs the work for tiny inputs.
    if (N * K * x.dtype.itemsize <= small_input_bytes) or rows_full < 8:
        xf = x.astype(jnp.float32)
        colsum = jnp.sum(xf, axis=0)                            # (K,)
        entsum = jnp.sum(xf * jnp.log(xf + EPS))                # sum x*log(x+eps)
    else:
        colsum, entsum = _imsat_stats_pallas(
            x, K=K, m=m, L=L, target_tile_bytes=target_tile_bytes,
            num_shards=num_shards, core_parallel=core_parallel)

    margin = colsum / n_total                                   # (K,) per-class marginal
    marg = -jnp.sum(margin * jnp.log(margin + EPS))
    cond = -entsum / n_total                                    # sign flip done once here
    w = dynamic_weight.astype(jnp.float32)
    mi = -w * marg + cond
    if use_dynamic:
        # stateful buffer update done under torch.no_grad in the original
        new_w = w + (math.log(K) - lax.stop_gradient(marg)) * 0.01
    else:
        new_w = w
    return mi, new_w


def _reference(x, w, use_dynamic=True):
    """Pure-JAX reference of IMSATDynamicWeight.forward."""
    N, K = x.shape
    x = x.astype(jnp.float32)
    margin = jnp.mean(x, axis=0)                                # (K,)
    cond = jnp.mean(-jnp.sum(x * jnp.log(x + EPS), axis=1))
    marg = -jnp.sum(margin * jnp.log(margin + EPS))
    mi = w * marg * -1.0 + cond
    new_w = w + (math.log(K) - marg) * 0.01 if use_dynamic else w
    return mi, new_w


def _check(N, K, seed, **kwargs):
    key = jax.random.PRNGKey(seed)
    logits = jax.random.normal(key, (N, K), dtype=jnp.float32)
    x = jax.nn.softmax(logits, axis=1)                          # simplex rows (N, K)
    dynamic_weight = jnp.asarray(1.0, dtype=jnp.float32)        # buffer init: torch.tensor(lamda)

    mi, new_w = imsat_dynamic_weight_forward(x, dynamic_weight, use_dynamic=True, **kwargs)
    mi = jax.block_until_ready(mi)
    new_w = jax.block_until_ready(new_w)

    mi_ref, new_w_ref = _reference(x, dynamic_weight, use_dynamic=True)
    np.testing.assert_allclose(np.asarray(mi), np.asarray(mi_ref), rtol=1e-5, atol=1e-6)
    np.testing.assert_allclose(np.asarray(new_w), np.asarray(new_w_ref), rtol=1e-5, atol=1e-6)


if __name__ == "__main__":
    # 1) Kernel path: aligned N (zero-copy bitcast packing), multi-tile accumulation.
    _check(4096, 10, seed=0, small_input_bytes=0, target_tile_bytes=8 * 640 * 4)
    # 2) Kernel path: ragged N -> single tiny pad + in-kernel iota mask of last tile.
    _check(4000, 10, seed=0, small_input_bytes=0, target_tile_bytes=8 * 640 * 4)
    # 3) Kernel path: two accumulator shards (what v7x uses, here with "parallel" semantics).
    _check(4096, 10, seed=0, small_input_bytes=0, target_tile_bytes=8 * 640 * 4, num_shards=2)
    # 4) Small-input fast path (no pallas_call; launch overhead >> work).
    _check(256, 10, seed=0)

    print("KERNEL_OK")
</pallas_src>

<mosaic_0001>
module attributes {stable_mosaic.version = 11 : i64} {
  func.func @kernel(%arg0: i32, %arg1: i32, %arg2: memref<8x640xf32, #tpu.memory_space<vmem>>, %arg3: memref<1x8x640xf32, #tpu.memory_space<vmem>>, %arg4: memref<1x8x640xf32, #tpu.memory_space<vmem>>) attributes {dimension_semantics = [#tpu.dimension_semantics<parallel>, #tpu.dimension_semantics<arbitrary>], iteration_bounds = array<i64: 1, 8>, scalar_prefetch = 0 : i64, scratch_operands = 0 : i64, tpu.core_type = #tpu.core_type<tc>, window_params = [{transform_indices = @transform_0, window_bounds = array<i64: 8, 640>}, {transform_indices = @transform_1, window_bounds = array<i64: 1, 8, 640>}, {transform_indices = @transform_2, window_bounds = array<i64: 1, 8, 640>}]} {
    %c0_i32 = arith.constant 0 : i32
    %0 = arith.cmpi eq, %arg1, %c0_i32 : i32
    %1 = arith.extui %0 : i1 to i32
    %c0_i32_0 = arith.constant 0 : i32
    %2 = arith.cmpi ne, %1, %c0_i32_0 : i32
    scf.if %2 {
      %cst_16 = arith.constant 0.000000e+00 : f32
      %20 = vector.broadcast %cst_16 : f32 to vector<1x8x640xf32>
      %c0_17 = arith.constant 0 : index
      %c0_18 = arith.constant 0 : index
      %c0_19 = arith.constant 0 : index
      %21 = vector.load %arg3[%c0_17, %c0_18, %c0_19] : memref<1x8x640xf32, #tpu.memory_space<vmem>>, vector<1x8x640xf32>
      tpu.vector_store %arg3[%c0_17, %c0_18, %c0_19], %20 {strides = array<i32>} : memref<1x8x640xf32, #tpu.memory_space<vmem>>, vector<1x8x640xf32>,
      %cst_20 = arith.constant 0.000000e+00 : f32
      %22 = vector.broadcast %cst_20 : f32 to vector<1x8x640xf32>
      %c0_21 = arith.constant 0 : index
      %c0_22 = arith.constant 0 : index
      %c0_23 = arith.constant 0 : index
      %23 = vector.load %arg4[%c0_21, %c0_22, %c0_23] : memref<1x8x640xf32, #tpu.memory_space<vmem>>, vector<1x8x640xf32>
      tpu.vector_store %arg4[%c0_21, %c0_22, %c0_23], %22 {strides = array<i32>} : memref<1x8x640xf32, #tpu.memory_space<vmem>>, vector<1x8x640xf32>,
    } else {
    }
    %c0 = arith.constant 0 : index
    %c0_1 = arith.constant 0 : index
    %3 = vector.load %arg2[%c0, %c0_1] : memref<8x640xf32, #tpu.memory_space<vmem>>, vector<8x640xf32>
    %cst = arith.constant 1.000000e-16 : f32
    %4 = vector.broadcast %cst : f32 to vector<8x640xf32>
    %5 = arith.addf %3, %4 : vector<8x640xf32>
    %6 = math.log %5 : vector<8x640xf32>
    %7 = arith.mulf %3, %6 : vector<8x640xf32>
    %c0_2 = arith.constant 0 : index
    %c0_3 = arith.constant 0 : index
    %c0_4 = arith.constant 0 : index
    %8 = vector.load %arg3[%c0_2, %c0_3, %c0_4] : memref<1x8x640xf32, #tpu.memory_space<vmem>>, vector<1x8x640xf32>
    %9 = vector.shape_cast %3 : vector<8x640xf32> to vector<1x8x640xf32>
    %cst_5 = arith.constant dense<0.000000e+00> : vector<8x640xf32>
    %10 = vector.multi_reduction <add>, %9, %cst_5 [0] : vector<1x8x640xf32> to vector<8x640xf32>
    %11 = vector.shape_cast %10 : vector<8x640xf32> to vector<1x8x640xf32>
    %12 = arith.addf %8, %11 : vector<1x8x640xf32>
    %c0_6 = arith.constant 0 : index
    %c0_7 = arith.constant 0 : index
    %c0_8 = arith.constant 0 : index
    %13 = vector.load %arg3[%c0_6, %c0_7, %c0_8] : memref<1x8x640xf32, #tpu.memory_space<vmem>>, vector<1x8x640xf32>
    tpu.vector_store %arg3[%c0_6, %c0_7, %c0_8], %12 {strides = array<i32>} : memref<1x8x640xf32, #tpu.memory_space<vmem>>, vector<1x8x640xf32>,
    %c0_9 = arith.constant 0 : index
    %c0_10 = arith.constant 0 : index
    %c0_11 = arith.constant 0 : index
    %14 = vector.load %arg4[%c0_9, %c0_10, %c0_11] : memref<1x8x640xf32, #tpu.memory_space<vmem>>, vector<1x8x640xf32>
    %15 = vector.shape_cast %7 : vector<8x640xf32> to vector<1x8x640xf32>
    %cst_12 = arith.constant dense<0.000000e+00> : vector<8x640xf32>
    %16 = vector.multi_reduction <add>, %15, %cst_12 [0] : vector<1x8x640xf32> to vector<8x640xf32>
    %17 = vector.shape_cast %16 : vector<8x640xf32> to vector<1x8x640xf32>
    %18 = arith.addf %14, %17 : vector<1x8x640xf32>
    %c0_13 = arith.constant 0 : index
    %c0_14 = arith.constant 0 : index
    %c0_15 = arith.constant 0 : index
    %19 = vector.load %arg4[%c0_13, %c0_14, %c0_15] : memref<1x8x640xf32, #tpu.memory_space<vmem>>, vector<1x8x640xf32>
    tpu.vector_store %arg4[%c0_13, %c0_14, %c0_15], %18 {strides = array<i32>} : memref<1x8x640xf32, #tpu.memory_space<vmem>>, vector<1x8x640xf32>,
    return
  }
  func.func @transform_0(%arg0: i32, %arg1: i32) -> (i32, i32) {
    %c8_i32 = arith.constant 8 : i32
    %0 = arith.muli %arg0, %c8_i32 : i32
    %1 = arith.addi %0, %arg1 : i32
    %c0_i32 = arith.constant 0 : i32
    %c0_i32_0 = arith.constant 0 : i32
    return %1, %c0_i32 : i32, i32
  }
  func.func @transform_1(%arg0: i32, %arg1: i32) -> (i32, i32, i32) {
    %c0_i32 = arith.constant 0 : i32
    %c0_i32_0 = arith.constant 0 : i32
    %c0_i32_1 = arith.constant 0 : i32
    return %arg0, %c0_i32, %c0_i32_0 : i32, i32, i32
  }
  func.func @transform_2(%arg0: i32, %arg1: i32) -> (i32, i32, i32) {
    %c0_i32 = arith.constant 0 : i32
    %c0_i32_0 = arith.constant 0 : i32
    %c0_i32_1 = arith.constant 0 : i32
    return %arg0, %c0_i32, %c0_i32_0 : i32, i32, i32
  }
}

</mosaic_0001>

<bundles_post_ra>
// kernel: tpu_custom_call.1
= control target key start
LH: loop header
LB: loop body
LE: loop exit
PB: predicated region body
PF: predicated region fallthrough
CT: control target
= control target key end

     0   :  { %8 = vsyncpa [#allocation3], 0  ;;  %s733_s0 = inlined_call_operand.hbm [shape: f32[64,640], index: 0, kind: input, shape index: {}]   ;;  %s734_s1 = inlined_call_operand.hbm [shape: f32[1,8,640], index: 1, kind: output, shape index: {0}]   ;;  %s735_s2 = inlined_call_operand.hbm [shape: f32[1,8,640], index: 2, kind: output, shape index: {1}]  }
   0x1   :  { %10 = vsyncpa [#allocation3 + $0x1], 0 }
   0x2   :  { %11 = vsyncpa [#allocation4], 0 }
   0x3   :  { %12 = vsyncpa [#allocation7], 0  ;;  %s606_s9 = smov 0   ;;  %s608_s10 = smov 0  }
   0x4   :  { %s610_s11 = smov 0   ;;  %s612_s12 = smov 0  }
   0x5   :  { %s614_s13 = smov 0   ;;  %s616_s14 = smov 0  }
   0x6 LB: > { %s356_s15 = sadd.s32 4294967295, %s585_s14   ;;  %s27_s16 = sadd.s32 1, %s581_s13  ;;  %s585_s14 = sphi %s616_s14, %s18_s14   ;;  %s581_s13 = sphi %s614_s13, %s743_s13   ;;  %s577_s12 = sphi %s612_s12, %s742_s12   ;;  %s573_s11 = sphi %s610_s11, %s741_s11   ;;  %s569_s10 = sphi %s608_s10, %s740_s10   ;;  %s565_s9 = sphi %s606_s9, %s739_s9  }
   0x7   : > { %p28_p0 = scmp.ge.s32.totalorder %s27_s16, 8  ;;  %s41_s17 = sadd.s32 1, %s573_s11 }
   0x8   : > { %p48_p1 = scmp.ne.s32.totalorder %s573_s11, %s569_s10  ;;  %p49_p2 = scmp.eq.s32.totalorder %s585_s14, 0 }
   0x9   : > { %s745_s16 = smov (%p28_p0, %s27_s16), 0  ;;  %p54_p4 = scmp.ne.s32.totalorder %s569_s10, %s565_s9 }
   0xa   : > { %p50_p3 = por %p49_p2, %p48_p1  ;;  %s38_s18 = ssub.s32 %s581_s13, %s745_s16 }
   0xb   : > { %p55_p5 = scmp.eq.s32.totalorder %s356_s15, 0  ;;  %p39_p6 = scmp.eq.s32.totalorder %s38_s18, 0 }
   0xc   : > { %p385_p8 = scmp.lt.s32.totalorder %s585_s14, 8  ;;  %s130_s21 = sand.u32 1, %s573_s11  }
   0xd   : > { %p647_p7 = por %p55_p5, %p54_p4  ;;  %s369_s22 = smul.u32 640, %s581_s13 }
   0xe   : > { %s653_s20 = scalar_select %p39_p6, %s573_s11, %s41_s17  }
   0xf   : > { %s368_s23 = smul.u32 40, %s130_s21  ;;  %s142_s26 = scalar_lea.hbm %s733_s0, %s369_s22 }
  0x10   : > { %p660_p9 = pnand %p385_p8, %p50_p3  ;;  %p360_p10 = scmp.ge.s32.totalorder %s585_s14, 1 }
  0x11   : > { %s134_s28 = scalar_lea.vmem [#allocation2], %s368_s23  ;;  %p149_p11 = scmp.lt.s32.totalorder %s585_s14, 9 }
  0x12   : > { %s144_s29 = sshll.u32 %s134_s28, 4  ;;  %s131_s30 = scalar_lea.sflag [#allocation3], %s130_s21  ;;  %s145_s29 = int_to_ptr.vmem [resolvable:$true] %s144_s29 }
  0x13   : > { %p453_p12 = pneg %p660_p9  ;;  %s464_s3 = scalar_lea.vmem %s145_s29, 640 }
  0x14   : > { %p465_p13 = scmp.ne.s32.totalorder %s145_s29, %s464_s3  ;;  %s587_s4 = smov [#allocation2]  }
  0x15   : > { %s469_s5 = sshll.u32 %s587_s4, 4  ;;  %s470_s5 = int_to_ptr.vmem [resolvable:$false] %s469_s5 }
  0x16   : > { %p467_p0 = pnand %p465_p13, %p453_p12  ;;  %s471_s6 = scalar_lea.vmem %s470_s5, 1280 }
  0x17   : > { %p472_p2 = scmp.lt.s32.totalorder %s145_s29, %s470_s5  ;;  %p473_p3 = scmp.lt.s32.totalorder %s471_s6, %s464_s3 }
  0x18   : > { %p468_p1 = pneg %p467_p0 }
  0x19   : > { %p474_p4 = por %p473_p3, %p472_p2 }
  0x1b   : > { %p475_p5 = pnand %p474_p4, %p468_p1 }
  0x1d   : > { %478 = shalt.err (!%p475_p5)
}
  0x1e   : > { %384 = dma.hbm_to_vmem [thread:$0]  (!%p660_p9), %s142_s26, 640, %s145_s29, %s131_s30  }
  0x1f   : > { %p150_p6 = pnand %p360_p10, %p149_p11 }
  0x20   : > { %s155_s7 = sand.u32 (!%p150_p6), 1, %s569_s10  }
  0x21   : > { %153 = sbr.rel (%p150_p6) target bundleno = 87 (0x57), region = 24  ;;  %s156_s9 = scalar_lea.sflag (!%p150_p6), [#allocation3], %s155_s7 }
  0x22   : > { %s370_s8 = smul.u32 (!%p150_p6), 40, %s155_s7 }
  0x24   : > { %s675_s17 = scalar_lea.vmem (!%p150_p6), [#allocation2], %s370_s8 }
  0x26   : > { %552 = dma.done.wait (%p647_p7), %s156_s9, 640  }
  0x27   : > { %554 = vsyncadd (%p647_p7), %s156_s9, 4294966656  ;;  %p361_p8 = scmp.ne.s32.totalorder %s577_s12, 0 }
  0x29   : > { %180 = sbr.rel (%p361_p8) target bundleno = 52 (0x34), region = 32 }
  0x2e   : > { %v588_v0 = vmov 0.0  }
  0x2f   : > { %181 = vst [vmem:[#allocation5] sm:$0xff] %v588_v0  ;;  %182 = vst [vmem:[#allocation5 + $0x8] sm:$0xff] %v588_v0 }
  0x30   : > { %183 = vst [vmem:[#allocation5 + $0x10] sm:$0xff] %v588_v0  ;;  %184 = vst [vmem:[#allocation5 + $0x18] sm:$0xff] %v588_v0 }
  0x31   : > { %185 = vst [vmem:[#allocation5 + $0x20] sm:$0xff] %v588_v0  ;;  %186 = vst [vmem:[#allocation6] sm:$0xff] %v588_v0 }
  0x32   : > { %187 = vst [vmem:[#allocation6 + $0x8] sm:$0xff] %v588_v0  ;;  %188 = vst [vmem:[#allocation6 + $0x10] sm:$0xff] %v588_v0 }
  0x33   : > { %189 = vst [vmem:[#allocation6 + $0x18] sm:$0xff] %v588_v0  ;;  %190 = vst [vmem:[#allocation6 + $0x20] sm:$0xff] %v588_v0 }
  0x34 PF: > { %v191_v1 = vld [vmem:[%s675_s17] sm:$0xff]  ;;  %v192_v3 = vld [vmem:[%s675_s17 + $0x8] sm:$0xff]  ;;  %v193_v8 = vld [vmem:[%s675_s17 + $0x10] sm:$0xff]  ;;  %p689_p7 = scmp.eq.s32.totalorder %s356_s15, 7  ;;  %s589_s18 = smov [#allocation5]  }
  0x35   : > { %v196_v4 = vadd.f32 1e-16, %v191_v1  ;;  %v197_v6 = vadd.f32 1e-16, %v192_v3  ;;  %v198_v10 = vadd.f32 1e-16, %v193_v8 }
  0x36   : > { %v216_v2 = vld [vmem:[#allocation5] sm:$0xff]  ;;  %v217_v7 = vld [vmem:[#allocation5 + $0x8] sm:$0xff]  ;;  %v195_v17 = vld [vmem:[%s675_s17 + $0x20] sm:$0xff]  ;;  %s266_s19 = sshll.u32 %s589_s18, 4  ;;  %s267_s19 = int_to_ptr.vmem [resolvable:$true] %s266_s19 }
  0x37   : > { %v226_v5 = vadd.f32 %v216_v2, %v191_v1  ;;  %v227_v9 = vadd.f32 %v217_v7, %v192_v3  ;;  %v218_v11 = vld [vmem:[#allocation5 + $0x10] sm:$0xff]  ;;  %v219_v13 = vld [vmem:[#allocation5 + $0x18] sm:$0xff]  ;;  %441 = vlog2.f32 %v196_v4  ;;  %v200_v19 = vadd.f32 1e-16, %v195_v17  ;;  %s479_s21 = scalar_lea.vmem %s267_s19, 640  ;;  %p486_p12 = scmp.lt.s32.totalorder %s267_s19, %s267_s19 }
  0x38   : > { %v194_v12 = vld [vmem:[%s675_s17 + $0x18] sm:$0xff]  ;;  %v228_v14 = vadd.f32 %v218_v11, %v193_v8  ;;  %v220_v18 = vld [vmem:[#allocation5 + $0x20] sm:$0xff]  ;;  %443 = vlog2.f32 %v197_v6  ;;  %p480_p9 = scmp.ne.s32.totalorder %s267_s19, %s479_s21  ;;  %p487_p13 = scmp.lt.s32.totalorder %s479_s21, %s479_s21 }
  0x39   : > { %231 = vst [vmem:[#allocation5] sm:$0xff] %v226_v5  ;;  %v199_v15 = vadd.f32 1e-16, %v194_v12  ;;  %v229_v16 = vadd.f32 %v219_v13, %v194_v12  ;;  %232 = vst [vmem:[#allocation5 + $0x8] sm:$0xff] %v227_v9  ;;  %v230_v20 = vadd.f32 %v220_v18, %v195_v17  ;;  %445 = vlog2.f32 %v198_v10 }
  0x3a   : > { %233 = vst [vmem:[#allocation5 + $0x10] sm:$0xff] %v228_v14  ;;  %p481_p10 = pnand %p480_p9, %p689_p7  ;;  %p488_p0 = por %p487_p13, %p486_p12 }
  0x3b   : > { %234 = vst [vmem:[#allocation5 + $0x18] sm:$0xff] %v229_v16  ;;  %447 = vlog2.f32 %v199_v15  ;;  %235 = vst [vmem:[#allocation5 + $0x20] sm:$0xff] %v230_v20 }
  0x3c   : > { %449 = vlog2.f32 %v200_v19  ;;  %p482_p11 = pneg %p481_p10 }
  0x3e   : > { %p489_p1 = pnand %p488_p0, %p482_p11 }
  0x40   : > { %492 = shalt.err (!%p489_p1)
}
  0x41   : > { %374 = dma.vmem_to_hbm [thread:$0]  (%p689_p7), %s267_s19, 640, %s734_s1, [#allocation4]   ;;  %v236_v25 = vld [vmem:[#allocation6] sm:$0xff]  ;;  %v237_v29 = vld [vmem:[#allocation6 + $0x8] sm:$0xff]  ;;  %v238_v33 = vld [vmem:[#allocation6 + $0x10] sm:$0xff] }
  0x42   : > { %v239_v37 = vld [vmem:[#allocation6 + $0x18] sm:$0xff]  ;;  %v240_v41 = vld [vmem:[#allocation6 + $0x20] sm:$0xff]  ;;  %s590_s23 = smov [#allocation6]  }
  0x43   : > { %s280_s24 = sshll.u32 %s590_s23, 4  ;;  %s281_s24 = int_to_ptr.vmem [resolvable:$true] %s280_s24 }
  0x44   : > { %v442_v21 = vpop.eup %441  ;;  %s503_s25 = scalar_lea.vmem %s281_s24, 640  ;;  %p510_p5 = scmp.lt.s32.totalorder %s281_s24, %s281_s24 }
  0x45   : > { %v444_v22 = vpop.eup %443  ;;  %v202_v23 = vmul.f32 0.6931472, %v442_v21  ;;  %p504_p2 = scmp.ne.s32.totalorder %s281_s24, %s503_s25  ;;  %p511_p6 = scmp.lt.s32.totalorder %s503_s25, %s503_s25 }
  0x46   : > { %v446_v24 = vpop.eup %445  ;;  %v204_v26 = vmul.f32 0.6931472, %v444_v22 }
  0x47   : > { %v211_v28 = vmul.f32 %v202_v23, %v191_v1  ;;  %v206_v30 = vmul.f32 0.6931472, %v446_v24  ;;  %p505_p3 = pnand %p504_p2, %p689_p7  ;;  %p512_p8 = por %p511_p6, %p510_p5 }
  0x48   : > { %v448_v27 = vpop.eup %447  ;;  %v212_v32 = vmul.f32 %v204_v26, %v192_v3 }
  0x49   : > { %v450_v31 = vpop.eup %449  ;;  %v208_v34 = vmul.f32 0.6931472, %v448_v27  ;;  %v246_v35 = vadd.f32 %v236_v25, %v211_v28  ;;  %v213_v36 = vmul.f32 %v206_v30, %v193_v8  ;;  %p506_p4 = pneg %p505_p3 }
  0x4a   : > { %v210_v38 = vmul.f32 0.6931472, %v450_v31  ;;  %v247_v39 = vadd.f32 %v237_v29, %v212_v32 }
  0x4b   : > { %v214_v40 = vmul.f32 %v208_v34, %v194_v12  ;;  %251 = vst [vmem:[#allocation6] sm:$0xff] %v246_v35  ;;  %v248_v42 = vadd.f32 %v238_v33, %v213_v36  ;;  %p513_p9 = pnand %p512_p8, %p506_p4 }
  0x4c   : > { %v215_v43 = vmul.f32 %v210_v38, %v195_v17  ;;  %252 = vst [vmem:[#allocation6 + $0x8] sm:$0xff] %v247_v39 }
  0x4d   : > { %v249_v44 = vadd.f32 %v239_v37, %v214_v40  ;;  %253 = vst [vmem:[#allocation6 + $0x10] sm:$0xff] %v248_v42 }
  0x4e   : > { %v250_v45 = vadd.f32 %v240_v41, %v215_v43 }
  0x4f   : > { %254 = vst [vmem:[#allocation6 + $0x18] sm:$0xff] %v249_v44 }
  0x50   : > { %255 = vst [vmem:[#allocation6 + $0x20] sm:$0xff] %v250_v45 }
  0x51   : > { %516 = shalt.err (!%p513_p9)
}
  0x52   : > { %376 = dma.vmem_to_hbm [thread:$0]  (%p689_p7), %s281_s24, 640, %s735_s2, [#allocation7]  }
  0x53   : > { %556 = dma.done.wait (%p689_p7), [#allocation4], 640  }
  0x54   : > { %558 = vsyncadd (%p689_p7), [#allocation4], 4294966656 }
  0x55   : > { %560 = dma.done.wait (%p689_p7), [#allocation7], 640  }
  0x56   : > { %562 = vsyncadd (%p689_p7), [#allocation7], 4294966656 }
  0x57 PF: > { %s18_s14 = sadd.s32 1, %s585_s14   ;;  %s739_s9 = smov %s569_s10 }
  0x58   : > { %p15_p10 = scmp.ge.s32.totalorder %s18_s14, 10   ;;  %s740_s10 = smov %s573_s11 }
  0x59   : > { %s741_s11 = smov %s653_s20  ;;  %s742_s12 = smov %s581_s13 }
  0x5a   : > { %s743_s13 = smov %s745_s16  ;;  %17 = sbr.rel (!%p15_p10) target bundleno = 6 (0x6), region = 75 }
  0x5f   :  { %297 = vsyncpa [#allocation3], 1 }
  0x60   :  { %299 = vsyncpa [#allocation3 + $0x1], 1 }
  0x61   :  { %300 = vsyncpa [#allocation4], 1 }
  0x62   :  { %302 = vsyncpa [#allocation4 + $0x1], 1 }
  0x63   :  { %303 = vsyncpa [#allocation7], 1 }

</bundles_post_ra>
